<compile_context>
chip_gen: v5e
topology: v5e:2x2
jax: 0.10.0
libtpu: 0.0.40
codegen_flags: <defaults>
</compile_context>

<pallas_src>
import functools

import jax
import jax.numpy as jnp
from jax.experimental import pallas as pl
from jax.experimental.pallas import tpu as pltpu


def _round_up(x, m):
    return (x + m - 1) // m * m


def _swiglu_kernel(x_ref, wgu_ref, wd_ref, o_ref, acc_ref, *, ti):
    k = pl.program_id(1)

    @pl.when(k == 0)
    def _():
        acc_ref[...] = jnp.zeros_like(acc_ref)

    x = x_ref[...]                                       # (tm, H) bf16
    # Fused gate+up projection: one MXU matmul with a 2*ti-wide RHS tile.
    gu = jnp.dot(x, wgu_ref[...],
                 preferred_element_type=jnp.float32)     # (tm, 2*ti) f32
    g = gu[:, :ti]
    u = gu[:, ti:]
    h = (g * jax.nn.sigmoid(g)) * u                      # SiLU(g) * u, f32
    # Partial down projection, accumulated over the intermediate axis.
    acc_ref[...] += jnp.dot(h.astype(wd_ref.dtype), wd_ref[...],
                            preferred_element_type=jnp.float32)

    @pl.when(k == pl.num_programs(1) - 1)
    def _():
        o_ref[...] = acc_ref[...].astype(o_ref.dtype)


def pick_intermediate_tile(intermediate_size):
    for cand in (2048, 1024, 512, 256, 128, 64):
        if intermediate_size % cand == 0:
            return cand
    return intermediate_size


def pack_swiglu_weights(gate_w, up_w, down_w, *, ti=None,
                        compute_dtype=jnp.bfloat16):
    """One-time weight packing — call at init, NOT per forward.

    gate_w / up_w: [I, H], down_w: [H, I] (PyTorch nn.Linear layout).
    Returns (wgu [H, 2*I], wd_t [I, H], ti): gate/up tiles of width `ti`
    interleaved along the last axis so the kernel reads one contiguous
    (H, 2*ti) block per intermediate step.
    """
    I, H = gate_w.shape
    if ti is None:
        ti = pick_intermediate_tile(I)
    assert I % ti == 0, "intermediate tile must divide intermediate_size"
    n = I // ti
    wg_t = jnp.transpose(gate_w).reshape(H, n, ti)
    wu_t = jnp.transpose(up_w).reshape(H, n, ti)
    wgu = jnp.stack([wg_t, wu_t], axis=2).reshape(H, 2 * I)
    wd_t = jnp.transpose(down_w)                         # [I, H]
    return wgu.astype(compute_dtype), wd_t.astype(compute_dtype), ti


def swiglu_mlp(x, wgu, wd_t, *, ti, tm=None):
    """x: [B, S, H]; wgu: [H, 2*I] packed gate+up; wd_t: [I, H]; ti | I."""
    B, S, H = x.shape
    I, H2 = wd_t.shape
    assert H2 == H and wgu.shape == (H, 2 * I) and I % ti == 0
    compute_dtype = wgu.dtype
    T = B * S

    if tm is None:
        # MXU-aligned token tile; never default to the whole token count.
        tm = min(256, _round_up(T, 8))
    assert tm % 8 == 0 or tm == T

    T_pad = _round_up(T, tm)
    x2d = x.reshape(T, H).astype(compute_dtype)
    if T_pad != T:
        x2d = jnp.pad(x2d, ((0, T_pad - T), (0, 0)))

    n_t = T_pad // tm
    n_k = I // ti

    itemsize = jnp.dtype(compute_dtype).itemsize
    cost = pl.CostEstimate(
        flops=6 * T * H * I,
        transcendentals=T * I,
        bytes_accessed=(T * H + 3 * H * I) * itemsize
        + T * H * jnp.dtype(x.dtype).itemsize,
    )

    out2d = pl.pallas_call(
        functools.partial(_swiglu_kernel, ti=ti),
        out_shape=jax.ShapeDtypeStruct((T_pad, H), x.dtype),
        grid_spec=pltpu.PrefetchScalarGridSpec(
            num_scalar_prefetch=0,
            grid=(n_t, n_k),
            in_specs=[
                pl.BlockSpec((tm, H), lambda i, k: (i, 0)),      # token tile
                pl.BlockSpec((H, 2 * ti), lambda i, k: (0, k)),  # gate+up tile
                pl.BlockSpec((ti, H), lambda i, k: (k, 0)),      # down tile
            ],
            out_specs=pl.BlockSpec((tm, H), lambda i, k: (i, 0)),
            scratch_shapes=[pltpu.VMEM((tm, H), jnp.float32)],   # f32 accumulator
        ),
        compiler_params=pltpu.CompilerParams(
            dimension_semantics=("parallel", "arbitrary"),
            vmem_limit_bytes=64 * 1024 * 1024,
        ),
        cost_estimate=cost,
    )(x2d, wgu, wd_t)

    if T_pad != T:
        out2d = out2d[:T]
    return out2d.reshape(B, S, H)


def swiglu_ref(x, gate_w, up_w, down_w, compute_dtype=jnp.bfloat16):
    """Mixed-precision reference mirroring the kernel's bf16/f32 behavior."""
    xc = x.astype(compute_dtype)
    g = jnp.einsum("bsh,ih->bsi", xc, gate_w.astype(compute_dtype),
                   preferred_element_type=jnp.float32)
    u = jnp.einsum("bsh,ih->bsi", xc, up_w.astype(compute_dtype),
                   preferred_element_type=jnp.float32)
    h = (g * jax.nn.sigmoid(g)) * u
    out = jnp.einsum("bsi,hi->bsh", h.astype(compute_dtype),
                     down_w.astype(compute_dtype),
                     preferred_element_type=jnp.float32)
    return out.astype(x.dtype)


if __name__ == "__main__":
    # Small config: hidden_size=32, intermediate_size=128, batch=2, seq=8.
    B, S, H, I = 2, 8, 32, 128
    key = jax.random.PRNGKey(0)
    kx, kg, ku, kd = jax.random.split(key, 4)

    x = jax.random.normal(kx, (B, S, H), dtype=jnp.float32)
    # Deterministic "nn.Linear(bias=False)"-shaped weights.
    gate_w = jax.random.normal(kg, (I, H), dtype=jnp.float32) * 0.05
    up_w = jax.random.normal(ku, (I, H), dtype=jnp.float32) * 0.05
    down_w = jax.random.normal(kd, (H, I), dtype=jnp.float32) * 0.05

    # Pack weights once (outside the hot path), then run the kernel with small
    # tiles so the (token x intermediate) grid + accumulator path is exercised.
    wgu, wd_t, ti = pack_swiglu_weights(gate_w, up_w, down_w, ti=64)
    out = swiglu_mlp(x, wgu, wd_t, ti=ti, tm=8)
    out = jax.block_until_ready(out)

    ref = swiglu_ref(x, gate_w, up_w, down_w)
    assert out.shape == (B, S, H)
    assert jnp.allclose(out.astype(jnp.float32), ref.astype(jnp.float32),
                        atol=2e-2, rtol=2e-2), float(
        jnp.max(jnp.abs(out.astype(jnp.float32) - ref.astype(jnp.float32))))

    print("KERNEL_OK")
</pallas_src>

<mosaic_0001>
module attributes {stable_mosaic.version = 11 : i64} {
  func.func @_swiglu_kernel(%arg0: i32, %arg1: i32, %arg2: memref<8x32xbf16, #tpu.memory_space<vmem>>, %arg3: memref<32x128xbf16, #tpu.memory_space<vmem>>, %arg4: memref<64x32xbf16, #tpu.memory_space<vmem>>, %arg5: memref<8x32xf32, #tpu.memory_space<vmem>>, %arg6: memref<8x32xf32, #tpu.memory_space<vmem>>) attributes {dimension_semantics = [#tpu.dimension_semantics<parallel>, #tpu.dimension_semantics<arbitrary>], iteration_bounds = array<i64: 2, 2>, scalar_prefetch = 0 : i64, scratch_operands = 1 : i64, tpu.core_type = #tpu.core_type<tc>, window_params = [{transform_indices = @transform_0, window_bounds = array<i64: 8, 32>}, {transform_indices = @transform_1, window_bounds = array<i64: 32, 128>}, {transform_indices = @transform_2, window_bounds = array<i64: 64, 32>}, {transform_indices = @transform_3, window_bounds = array<i64: 8, 32>}]} {
    %c0_i32 = arith.constant 0 : i32
    %0 = arith.cmpi eq, %arg1, %c0_i32 : i32
    %1 = arith.extui %0 : i1 to i32
    %c0_i32_0 = arith.constant 0 : i32
    %2 = arith.cmpi ne, %1, %c0_i32_0 : i32
    scf.if %2 {
      %cst_13 = arith.constant 0.000000e+00 : f32
      %24 = vector.broadcast %cst_13 : f32 to vector<8x32xf32>
      %c0_14 = arith.constant 0 : index
      %c0_15 = arith.constant 0 : index
      %25 = vector.load %arg6[%c0_14, %c0_15] : memref<8x32xf32, #tpu.memory_space<vmem>>, vector<8x32xf32>
      tpu.vector_store %arg6[%c0_14, %c0_15], %24 {strides = array<i32>} : memref<8x32xf32, #tpu.memory_space<vmem>>, vector<8x32xf32>,
    } else {
    }
    %c0 = arith.constant 0 : index
    %c0_1 = arith.constant 0 : index
    %3 = vector.load %arg2[%c0, %c0_1] : memref<8x32xbf16, #tpu.memory_space<vmem>>, vector<8x32xbf16>
    %c0_2 = arith.constant 0 : index
    %c0_3 = arith.constant 0 : index
    %4 = vector.load %arg3[%c0_2, %c0_3] : memref<32x128xbf16, #tpu.memory_space<vmem>>, vector<32x128xbf16>
    %cst = arith.constant dense<0.000000e+00> : vector<8x128xf32>
    %5 = tpu.matmul %3, %4, %cst {dimension_numbers = #tpu.dot_dimension_numbers<[1], [0], [0], [1], [0, 0, 1, 1], [], []>} : vector<8x32xbf16>, vector<32x128xbf16>, vector<8x128xf32> -> vector<8x128xf32>
    %6 = vector.extract_strided_slice %5 {offsets = [0, 0], sizes = [8, 64], strides = [1, 1]} : vector<8x128xf32> to vector<8x64xf32>
    %7 = vector.extract_strided_slice %5 {offsets = [0, 64], sizes = [8, 64], strides = [1, 1]} : vector<8x128xf32> to vector<8x64xf32>
    %8 = arith.negf %6 : vector<8x64xf32>
    %9 = math.exp %8 : vector<8x64xf32>
    %cst_4 = arith.constant 1.000000e+00 : f32
    %10 = vector.broadcast %cst_4 : f32 to vector<8x64xf32>
    %11 = arith.addf %10, %9 : vector<8x64xf32>
    %12 = arith.divf %10, %11 : vector<8x64xf32>
    %13 = arith.mulf %6, %12 : vector<8x64xf32>
    %14 = arith.mulf %13, %7 : vector<8x64xf32>
    %c0_5 = arith.constant 0 : index
    %c0_6 = arith.constant 0 : index
    %15 = vector.load %arg6[%c0_5, %c0_6] : memref<8x32xf32, #tpu.memory_space<vmem>>, vector<8x32xf32>
    %16 = arith.truncf %14 : vector<8x64xf32> to vector<8x64xbf16>
    %c0_7 = arith.constant 0 : index
    %c0_8 = arith.constant 0 : index
    %17 = vector.load %arg4[%c0_7, %c0_8] : memref<64x32xbf16, #tpu.memory_space<vmem>>, vector<64x32xbf16>
    %cst_9 = arith.constant dense<0.000000e+00> : vector<8x32xf32>
    %18 = tpu.matmul %16, %17, %cst_9 {dimension_numbers = #tpu.dot_dimension_numbers<[1], [0], [0], [1], [0, 0, 1, 1], [], []>} : vector<8x64xbf16>, vector<64x32xbf16>, vector<8x32xf32> -> vector<8x32xf32>
    %19 = arith.addf %15, %18 : vector<8x32xf32>
    %c0_10 = arith.constant 0 : index
    %c0_11 = arith.constant 0 : index
    %20 = vector.load %arg6[%c0_10, %c0_11] : memref<8x32xf32, #tpu.memory_space<vmem>>, vector<8x32xf32>
    tpu.vector_store %arg6[%c0_10, %c0_11], %19 {strides = array<i32>} : memref<8x32xf32, #tpu.memory_space<vmem>>, vector<8x32xf32>,
    %c1_i32 = arith.constant 1 : i32
    %21 = arith.cmpi eq, %arg1, %c1_i32 : i32
    %22 = arith.extui %21 : i1 to i32
    %c0_i32_12 = arith.constant 0 : i32
    %23 = arith.cmpi ne, %22, %c0_i32_12 : i32
    scf.if %23 {
      %c0_13 = arith.constant 0 : index
      %c0_14 = arith.constant 0 : index
      %24 = vector.load %arg6[%c0_13, %c0_14] : memref<8x32xf32, #tpu.memory_space<vmem>>, vector<8x32xf32>
      %c0_15 = arith.constant 0 : index
      %c0_16 = arith.constant 0 : index
      %25 = vector.load %arg5[%c0_15, %c0_16] : memref<8x32xf32, #tpu.memory_space<vmem>>, vector<8x32xf32>
      tpu.vector_store %arg5[%c0_15, %c0_16], %24 {strides = array<i32>} : memref<8x32xf32, #tpu.memory_space<vmem>>, vector<8x32xf32>,
    } else {
    }
    return
  }
  func.func @transform_0(%arg0: i32, %arg1: i32) -> (i32, i32) {
    %c0_i32 = arith.constant 0 : i32
    %c0_i32_0 = arith.constant 0 : i32
    return %arg0, %c0_i32 : i32, i32
  }
  func.func @transform_1(%arg0: i32, %arg1: i32) -> (i32, i32) {
    %c0_i32 = arith.constant 0 : i32
    %c0_i32_0 = arith.constant 0 : i32
    return %c0_i32, %arg1 : i32, i32
  }
  func.func @transform_2(%arg0: i32, %arg1: i32) -> (i32, i32) {
    %c0_i32 = arith.constant 0 : i32
    %c0_i32_0 = arith.constant 0 : i32
    return %arg1, %c0_i32 : i32, i32
  }
  func.func @transform_3(%arg0: i32, %arg1: i32) -> (i32, i32) {
    %c0_i32 = arith.constant 0 : i32
    %c0_i32_0 = arith.constant 0 : i32
    return %arg0, %c0_i32 : i32, i32
  }
}

</mosaic_0001>

<bundles_post_ra>
// kernel: tpu_custom_call.1
= control target key start
LH: loop header
LB: loop body
LE: loop exit
PB: predicated region body
PF: predicated region fallthrough
CT: control target
= control target key end

     0   :  { %s975_s0 = inlined_call_operand.vmem [shape: bf16[16,32], index: 0, kind: input, shape index: {}]   ;;  %s976_s1 = inlined_call_operand.vmem [shape: bf16[32,256], index: 1, kind: input, shape index: {}]   ;;  %s977_s2 = inlined_call_operand.vmem [shape: bf16[128,32], index: 2, kind: input, shape index: {}]   ;;  %s978_s3 = inlined_call_operand.hbm [shape: f32[16,32], index: 3, kind: output, shape index: {}]  }
   0x1   :  { %981 = sst [smem:[#allocation8_spill]] %s976_s1 }
   0x2   :  { %8 = vsyncpa [#allocation5], 0 }
   0x3   :  { %10 = vsyncpa [#allocation5 + $0x1], 0  ;;  %s794_s12 = smov 0   ;;  %s796_s13 = smov 0  }
   0x4   :  { %s798_s14 = smov 0   ;;  %s800_s15 = smov 0  }
   0x5   :  { %s802_s16 = smov 0   ;;  %s804_s17 = smov 0  }
   0x6   :  { %s806_s18 = smov 0   ;;  %s808_s19 = smov 0  }
   0x7   :  { %s810_s20 = smov 0   ;;  %s812_s21 = smov 0  }
   0x8 LB: > { %s516_s22 = sadd.s32 4294967295, %s770_s21   ;;  %s517_s23 = sadd.s32 4294967294, %s770_s21   ;;  %s770_s21 = sphi %s812_s21, %s16_s21   ;;  %s766_s20 = sphi %s810_s20, %s997_s20   ;;  %s762_s19 = sphi %s808_s19, %s996_s19   ;;  %s758_s18 = sphi %s806_s18, %s995_s18   ;;  %s754_s17 = sphi %s804_s17, %s994_s17   ;;  %s750_s16 = sphi %s802_s16, %s993_s16   ;;  %s746_s15 = sphi %s800_s15, %s992_s15   ;;  %s742_s14 = sphi %s798_s14, %s991_s14   ;;  %s738_s13 = sphi %s796_s13, %s990_s13   ;;  %s734_s12 = sphi %s794_s12, %s989_s12  }
   0x9   : > { %s25_s24 = sadd.s32 1, %s762_s19  ;;  %s28_s25 = sadd.s32 1, %s766_s20 }
   0xa   : > { %p26_p0 = scmp.ge.s32.totalorder %s25_s24, 2  ;;  %s61_s26 = sadd.s32 1, %s750_s16 }
   0xb   : > { %p68_p1 = scmp.ne.s32.totalorder %s750_s16, %s746_s15  ;;  %p69_p2 = scmp.eq.s32.totalorder %s770_s21, 0 }
   0xc   : > { %s999_s24 = smov (%p26_p0, %s25_s24), 0  ;;  %s1001_s25 = smov (!%p26_p0, %s28_s25), %s766_s20 }
   0xd   : > { %s58_s27 = ssub.s32 %s762_s19, %s999_s24  ;;  %p857_p3 = por %p69_p2, %p68_p1 }
   0xe   : > { %p30_p4 = scmp.ge.s32.totalorder %s1001_s25, 2  ;;  %p59_p5 = scmp.eq.s32.totalorder %s58_s27, 0 }
   0xf   : > { %s113_s29 = sadd.s32 1, %s742_s14  ;;  %p123_p6 = scmp.ne.s32.totalorder %s742_s14, %s738_s13 }
  0x10   : > { %s1003_s25 = smov (%p30_p4, %s1001_s25), 0  ;;  %p124_p7 = scmp.eq.s32.totalorder %s516_s22, 3 }
  0x11   : > { %983 = sst [smem:[#allocation7_spill]] %s1003_s25  ;;  %s110_s4 = ssub.s32 %s766_s20, %s1003_s25 }
  0x12   : > { %s867_s30 = scalar_select %p59_p5, %s750_s16, %s61_s26  }
  0x13   : > { %p111_p8 = scmp.eq.s32.totalorder %s110_s4, 0  ;;  %p129_p9 = scmp.ne.s32.totalorder %s738_s13, %s734_s12 }
  0x14   : > { %p873_p10 = por %p124_p7, %p123_p6  ;;  %p130_p11 = scmp.eq.s32.totalorder %s517_s23, 3 }
  0x15   : > { %s878_s6 = scalar_select %p111_p8, %s742_s14, %s113_s29  }
  0x16   : > { %p880_p12 = por %p130_p11, %p129_p9  ;;  %p519_p13 = scmp.ge.s32.totalorder %s770_s21, 4 }
  0x18   : > { %146 = sbr.rel (%p519_p13) target bundleno = 43 (0x2b), region = 16 }
  0x1d   : > { %156 = sbr.rel (!%p857_p3) target bundleno = 43 (0x2b), region = 24  ;;  %s158_s8 = sand.u32 (%p857_p3), 1, %s750_s16  }
  0x1e   : > { %s521_s9 = sshll.u32 (%p857_p3), %s762_s19, 2  ;;  %s520_s10 = sshll.u32 (%p857_p3), %s158_s8, 4 }
  0x1f   : > { %s986_s1 = sld [smem:[#allocation8_spill]] (%p857_p3)  ;;  %s160_s26 = scalar_lea.vmem (%p857_p3), [#allocation3], %s520_s10 }
  0x25   : > { %s162_s23 = scalar_lea.vmem %s986_s1, %s521_s9 }
  0x26   : > { %v179_v0 = vld [vmem:[%s162_s23] sm:$0xf]  ;;  %v181_v1 = vld [vmem:[%s162_s23 + $0x8] sm:$0xf]  ;;  %v183_v2 = vld [vmem:[%s162_s23 + $0x10] sm:$0xf] }
  0x27   : > { %180 = vst [vmem:[%s160_s26] sm:$0xf] %v179_v0  ;;  %v185_v3 = vld [vmem:[%s162_s23 + $0x18] sm:$0xf] }
  0x28   : > { %182 = vst [vmem:[%s160_s26 + $0x4] sm:$0xf] %v181_v1 }
  0x29   : > { %184 = vst [vmem:[%s160_s26 + $0x8] sm:$0xf] %v183_v2 }
  0x2a   : > { %186 = vst [vmem:[%s160_s26 + $0xc] sm:$0xf] %v185_v3 }
  0x2b PF: > { %p522_p0 = scmp.ge.s32.totalorder %s770_s21, 1  ;;  %p226_p1 = scmp.lt.s32.totalorder %s770_s21, 5 }
  0x2d   : > { %p227_p2 = pnand %p522_p0, %p226_p1 }
  0x2e   : > { %s233_s27 = sand.u32 (!%p227_p2), 1, %s746_s15   ;;  %s980_s28 = sand.u32 (!%p227_p2), 1, %s738_s13  }
  0x2f   : > { %230 = sbr.rel (%p227_p2) target bundleno = 465 (0x1d1), region = 69  ;;  %s523_s29 = sshll.u32 (!%p227_p2), %s233_s27, 4 }
  0x30   : > { %s898_s4 = sshll.u32 (!%p227_p2), %s980_s28, 3  ;;  %p265_p3 = scmp.lt.s32.totalorder (!%p227_p2), %s758_s18, 1 }
  0x31   : > { %s526_s8 = sshll.u32 (!%p227_p2), %s754_s17, 3  ;;  %s235_s27 = scalar_lea.vmem (!%p227_p2), [#allocation3], %s523_s29 }
  0x32   : > { %p270_p4 = scmp.lt.s32.totalorder (!%p227_p2), %s526_s8, 15  ;;  %s264_s28 = scalar_lea.vmem (!%p227_p2), [#allocation4], %s898_s4 }
  0x33   : > { %p528_p5 = scmp.ne.s32.totalorder (!%p227_p2), %s754_s17, 0 }
  0x34   : > { %s266_s9 = scalar_select %p265_p3, %s758_s18, 1 }
  0x35   : > { %s1005_s8 = smov (!%p270_p4, %s526_s8), 15  ;;  %279 = sbr.rel (%p528_p5) target bundleno = 60 (0x3c), region = 77 }
  0x36   : > { %s525_s10 = sshll.u32 %s266_s9, 2  ;;  %s527_s26 = sshll.u32 %s1005_s8, 2 }
  0x37   : > { %s268_s23 = scalar_lea.vmem %s975_s0, %s525_s10  ;;  %s909_s15 = scalar_lea.vmem %s977_s2, %s527_s26 }
  0x3a   : > { %vm280_vm0 = vcmask 261120   ;;  %v772_v4 = vmov 0.0  }
  0x3b   : > { %281 = vst.msk [vmem:[#allocation2] sm:$0xff] %vm280_vm0, %v772_v4 }
  0x3c PF: > { %v562_v5 = vld [vmem:[%s235_s27 + $0x8] sm:$0xff]  ;;  %v561_v6 = vld [vmem:[%s235_s27] sm:$0xff]  ;;  %vm299_vm1 = vcmask 261120   ;;  %s773_s1 = smov 64   ;;  %vm375_vm6 = vcmask 523264   ;;  %p556_p6 = scmp.ne.s32.totalorder %s754_s17, 1 }
  0x3d   : > { %309 = vmatpush.bf16.msra.mxu0 %v562_v5  ;;  %v282_v7 = vld [vmem:[%s268_s23] sm:$0xf]  ;;  %v566_v8 = vld [vmem:[%s909_s15 + $0x18] sm:$0xff]  ;;  %v565_v9 = vld [vmem:[%s909_s15 + $0x10] sm:$0xff] }
  0x3e   : > { %383 = vmatpush.bf16.msra.mxu1 %v566_v8  ;;  %v564_v10 = vld [vmem:[%s909_s15 + $0x8] sm:$0xff]  ;;  %v563_v16 = vld [vmem:[%s909_s15] sm:$0xff] }
  0x41   : > { %310 = vmatpush.bf16.msra.mxu0 %v561_v6 }
  0x42   : > { %384 = vmatpush.bf16.msra.mxu1 %v565_v9  ;;  %v341_v31 = vld [vmem:[#allocation2] sm:$0xff] }
  0x44   : > { %537 = vmatmul.msk.bf16.vlgmr.msra.gmra.mxu0 %vm299_vm1, %v282_v7 }
  0x46   : > { %385 = vmatpush.bf16.msra.mxu1 %v564_v10 }
  0x4a   : > { %386 = vmatpush.bf16.msra.mxu1 %v563_v16 }
  0xc1   : > { %v312_v11 = vpop.f32.mrf.mxu0 }
  0xc2   : > { %337 = vrot.lane.b32.xlu0 %v312_v11, %s773_s1  ;;  %v538_v13 = vmul.f32 -1.442695, %v312_v11 }
  0xc4   : > { %656 = vpow2.f32 %v538_v13 }
  0xc9   : > { %v314_v12 = vpop.f32.mrf.mxu0 }
  0xca   : > { %v657_v14 = vpop.eup %656 }
  0xcb   : > { %v319_v15 = vadd.f32 1.0, %v657_v14 }
  0xcd   : > { %658 = vrcp.f32 %v319_v15  ;;  %v331_v22 = vand.u32 2147483648, %v319_v15  ;;  %vm325_vm3 = vweird.f32 %v319_v15  ;;  %v329_v23 = vand.u32 2147483647, %v319_v15 }
  0xcf   : > { %v332_v25 = vor.u32 1.1754944e-38, %v331_v22  ;;  %vm330_vm5 = vcmp.eq.f32.partialorder %v329_v23, 8.507059e+37 }
  0xd3   : > { %v659_v17 = vpop.eup %658 }
  0xd4   : > { %v321_v18 = vmul.f32 %v659_v17, %v319_v15  ;;  %vm326_vm2 = vweird.f32 %v659_v17 }
  0xd5   : > { %vm327_vm4 = vmor %vm325_vm3, %vm326_vm2 }
  0xd6   : > { %v322_v19 = vsub.f32 1.0, %v321_v18 }
  0xd8   : > { %v323_v20 = vmul.f32 %v659_v17, %v322_v19 }
  0xda   : > { %v324_v21 = vadd.f32 %v659_v17, %v323_v20 }
  0xdc   : > { %v328_v24 = vsel %vm327_vm4, %v659_v17, %v324_v21 }
  0xdd   : > { %v333_v26 = vsel %vm330_vm5, %v332_v25, %v328_v24 }
  0xde   : > { %v335_v27 = vmul.f32 %v333_v26, %v312_v11 }
 0x134   : > { %v338_v28 = vpop.permute.xlu0 %337 }
 0x135   : > { %v340_v29 = vmul.f32 %v338_v28, %v335_v27 }
 0x137   : > { %v342_v30 = vpack.c.bf16 %v340_v29, %v340_v29 }
 0x139   : > { %555 = vmatmul.msk.bf16.vlgmr.msra.gmra.mxu1 %vm375_vm6, %v342_v30 }
 0x1b6   : > { %v388_v32 = vpop.f32.mrf.mxu1 }
 0x1b7   : > { %v392_v33 = vadd.f32 %v388_v32, %v341_v31 }
 0x1b9   : > { %393 = vst.msk [vmem:[#allocation2] sm:$0xff] %vm299_vm1, %v392_v33 }
 0x1ba   : > { %397 = sbr.rel (%p556_p6) target bundleno = 450 (0x1c2), region = 81 }
 0x1be   : > { %v390_v34 = vpop.f32.mrf.mxu1 }
 0x1c0   : > { %v398_v35 = vld [vmem:[#allocation2] sm:$0xff] }
 0x1c1   : > { %399 = vst.msk [vmem:[%s264_s28] sm:$0xff] %vm299_vm1, %v398_v35 }
 0x1c2 PF: > { %s558_s25 = sshll.u32 %s758_s18, 3  ;;  %s413_s10 = sshll.u32 %s264_s28, 4  ;;  %s414_s10 = int_to_ptr.vmem [resolvable:$true] %s413_s10 }
 0x1c3   : > { %s411_s9 = scalar_lea.hbm %s978_s3, %s558_s25  ;;  %s987_s11 = sand.u32 1, %s738_s13  }
 0x1c4   : > { %s415_s17 = sshll.u32 %s411_s9, 4  ;;  %s401_s22 = scalar_lea.sflag [#allocation5], %s987_s11  ;;  %s416_s17 = int_to_ptr.hbm [resolvable:$true] %s415_s17 }
 0x1c5   : > { %s674_s23 = sshra.s32 %s416_s17, 4  ;;  %s680_s27 = scalar_lea.hbm %s978_s3, 16  ;;  %s675_s23 = int_to_ptr.hbm [resolvable:$true] %s674_s23 }
 0x1c6   : > { %s676_s26 = scalar_lea.hbm %s675_s23, 8  ;;  %p681_p11 = scmp.lt.s32.totalorder %s675_s23, %s978_s3 }
 0x1c7   : > { %p677_p7 = scmp.ne.s32.totalorder %s675_s23, %s676_s26  ;;  %p682_p13 = scmp.lt.s32.totalorder %s680_s27, %s676_s26 }
 0x1c9   : > { %p678_p8 = pnand %p677_p7, %p873_p10  ;;  %p683_p0 = por %p682_p13, %p681_p11 }
 0x1cb   : > { %p679_p9 = pneg %p678_p8 }
 0x1cd   : > { %p684_p1 = pnand %p683_p0, %p679_p9 }
 0x1cf   : > { %687 = shalt.err (!%p684_p1)
}
 0x1d0   : > { %567 = dma.vmem_to_hbm [thread:$0]  (%p873_p10), %s414_s10, 128, %s416_s17, %s401_s22  }
 0x1d1 PF: > { %p573_p2 = scmp.ge.s32.totalorder %s770_s21, 2  ;;  %s427_s28 = sand.u32 1, %s734_s12  }
 0x1d2   : > { %s428_s4 = scalar_lea.sflag [#allocation5], %s427_s28 }
 0x1d3   : > { %p570_p3 = pnand %p573_p2, %p880_p12 }
 0x1d5   : > { %p571_p4 = pneg %p570_p3 }
 0x1d7   : > { %729 = dma.done.wait (%p571_p4), %s428_s4, 128  }
 0x1d8   : > { %731 = vsyncadd (%p571_p4), %s428_s4, 4294967168  ;;  %s16_s21 = sadd.s32 1, %s770_s21   ;;  %s988_s5 = sld [smem:[#allocation7_spill]] }
 0x1d9   : > { %p13_p5 = scmp.ge.s32.totalorder %s16_s21, 6   ;;  %s989_s12 = smov %s738_s13 }
 0x1da   : > { %s990_s13 = smov %s742_s14  ;;  %s991_s14 = smov %s878_s6 }
 0x1db   : > { %s992_s15 = smov %s750_s16  ;;  %s993_s16 = smov %s867_s30 }
 0x1dc   : > { %s994_s17 = smov %s762_s19  ;;  %s995_s18 = smov %s766_s20 }
 0x1dd   : > { %s996_s19 = smov %s999_s24  ;;  %15 = sbr.rel (!%p13_p5) target bundleno = 8 (0x8), region = 127 }
 0x1de   : > { %s997_s20 = smov %s988_s5 }
 0x1e2   :  { %434 = vsyncpa [#allocation5], 1 }
 0x1e3   :  { %436 = vsyncpa [#allocation5 + $0x1], 1 }

</bundles_post_ra>
